<compile_context>
chip_gen: v7x
topology: tpu7x:2x2x1
jax: 0.10.0
libtpu: 0.0.40
codegen_flags: <defaults>
</compile_context>

<pallas_src>
import functools

import jax
import jax.numpy as jnp
from jax import lax
from jax.experimental import pallas as pl
from jax.experimental.pallas import tpu as pltpu


def _round_up(x, m):
    return ((x + m - 1) // m) * m


def _device_defaults():
    """(num_partitions, per-input-per-buffer block byte budget) for the local TPU."""
    kind = ""
    try:
        kind = jax.devices()[0].device_kind.lower()
    except Exception:
        pass
    if "v7" in kind or "7x" in kind:
        # 2 TensorCores/chip: shard rows across both via the leading 'parallel' axis.
        # 4 MiB input blocks -> 2 inputs x 2 buffers = 16 MiB, well inside the 32 MiB
        # scoped budget and the 64 MiB physical VMEM per TC.
        return 2, 4 * 1024 * 1024
    if "v5 lite" in kind or "v5lite" in kind or "v5e" in kind:
        # Single TensorCore; keep 2 MiB blocks (8 MiB of input buffers).
        return 1, 2 * 1024 * 1024
    # v6e and unknown chips: single TensorCore, 4 MiB blocks (16 MiB of input buffers).
    return 1, 4 * 1024 * 1024


def _bce_sum_kernel(x_ref, z_ref, out_ref, acc_ref, *, steps, row_tile, rows,
                    acc_rows, needs_mask):
    """Streaming BCE-with-logits sum over a (rows, lane_width) slab.

    Grid = (partitions, steps); the trailing 'arbitrary' axis is the sequential
    reduction.  acc_ref is a small (acc_rows, lane) accumulator: each step folds its
    (row_tile, lane) tile into it with sublane-aligned vreg adds (no XLU, no full-tile
    accumulator load/store in the steady state).  The single cross-lane reduce and the
    output store run once per partition; only edge/overflow tiles pay for masking.
    """
    p = pl.program_id(0)
    s = pl.program_id(1)

    @pl.when(s == 0)
    def _():
        acc_ref[...] = jnp.zeros_like(acc_ref)

    x = x_ref[...].astype(jnp.float32)
    z = z_ref[...].astype(jnp.float32)
    # PyTorch-stable BCE-with-logits: max(x, 0) - x*z + log(1 + exp(-|x|)).
    elem = jnp.maximum(x, 0.0) - x * z + jnp.log1p(jnp.exp(-jnp.abs(x)))

    lane = elem.shape[1]
    fold = row_tile // acc_rows

    def _accumulate(e):
        if fold > 1:
            # (row_tile, lane) -> (fold, acc_rows, lane): splits the sublane dim at
            # (8,128)-tile boundaries, so the axis-0 sum is plain vector adds.
            e = e.reshape(fold, acc_rows, lane).sum(axis=0)
        acc_ref[...] += e

    if not needs_mask:
        _accumulate(elem)
    else:
        start = (p * steps + s) * row_tile

        @pl.when(start + row_tile <= rows)      # interior tile: no mask
        def _():
            _accumulate(elem)

        @pl.when(start + row_tile > rows)       # edge / duplicated tile: mask rows >= rows
        def _():
            rid = lax.broadcasted_iota(jnp.int32, elem.shape, 0) + start
            _accumulate(jnp.where(rid < rows, elem, 0.0))

    @pl.when(s == steps - 1)
    def _():
        out_ref[...] = jnp.broadcast_to(jnp.sum(acc_ref[...]), out_ref.shape)


def last_layer_forward_bce(logits, target):
    """Equivalent of LastLayer(loss_type='bce').forward(logits, target)."""
    assert logits.shape == target.shape
    total = int(logits.size)
    num_partitions, block_bytes = _device_defaults()

    x = logits.reshape(-1)
    z = target.reshape(-1)

    # Widest lane count (multiple of 128) that divides the element count, so the
    # flatten -> (rows, lane_width) reshape is free (no pad, no extra HBM pass).
    lane_width = next((c for c in (1024, 512, 256, 128) if total % c == 0), None)
    if lane_width is None:
        # Pathological element count (not a multiple of 128; never hit by NCHW image
        # tensors).  Pad with a finite zero-contribution sentinel: max(-1e4,0)=0,
        # (-1e4)*0=0, log1p(exp(-1e4))=0.
        lane_width = 128
        pad = (-total) % lane_width
        x = jnp.pad(x, (0, pad), constant_values=-1e4)
        z = jnp.pad(z, (0, pad), constant_values=0.0)
        total += pad

    rows = total // lane_width
    x = x.reshape(rows, lane_width)
    z = z.reshape(rows, lane_width)

    itemsize = max(x.dtype.itemsize, z.dtype.itemsize)
    rtmax = max(8, (block_bytes // (lane_width * itemsize)) // 8 * 8)

    if rows <= rtmax:
        # Whole slab fits in one block: no row over-coverage, no masking, one grid step.
        P, steps, row_tile = 1, 1, rows
    else:
        P = num_partitions
        rows_pp = pl.cdiv(rows, P)
        steps = pl.cdiv(rows_pp, rtmax)
        # Re-derive the tile from the step count so over-covered rows are at most ~7
        # per step instead of up to row_tile-1 per partition.
        row_tile = _round_up(pl.cdiv(rows_pp, steps), 8)

    needs_mask = (P * steps * row_tile) != rows
    last_block = pl.cdiv(rows, row_tile) - 1
    acc_rows = 8 if row_tile % 8 == 0 else row_tile   # row_tile%8!=0 only in the 1-block case

    def in_index(p, s):
        # Clamp so over-covering grid steps re-read the last valid block instead of
        # running past the (unpadded) array; their contribution is masked to zero.
        return (jnp.minimum(p * steps + s, last_block), 0)

    in_spec = pl.BlockSpec((row_tile, lane_width), in_index)

    kernel = functools.partial(
        _bce_sum_kernel, steps=steps, row_tile=row_tile, rows=rows,
        acc_rows=acc_rows, needs_mask=needs_mask)

    bytes_per_elem = x.dtype.itemsize + z.dtype.itemsize
    cost = pl.CostEstimate(
        flops=6 * rows * lane_width,
        transcendentals=2 * rows * lane_width,
        bytes_accessed=bytes_per_elem * rows * lane_width,
    )

    partials = pl.pallas_call(
        kernel,
        out_shape=jax.ShapeDtypeStruct((P, 8, 128), jnp.float32),
        grid_spec=pltpu.PrefetchScalarGridSpec(
            num_scalar_prefetch=0,
            grid=(P, steps),
            in_specs=[in_spec, in_spec],
            out_specs=pl.BlockSpec((1, 8, 128), lambda p, s: (p, 0, 0)),
            scratch_shapes=[pltpu.VMEM((acc_rows, lane_width), jnp.float32)],
        ),
        compiler_params=pltpu.CompilerParams(
            dimension_semantics=("parallel", "arbitrary"),
            # Matches the v6e/v7x default scoped-VMEM budget and raises v5e's 16 MiB
            # default enough for the chosen block sizes; far below physical VMEM.
            vmem_limit_bytes=32 * 1024 * 1024,
        ),
        cost_estimate=cost,
    )(x, z)

    return jnp.sum(partials[:, 0, 0])


# TODO(synk): 'kl', 'geometric', and 'adversarial' branches depend on a Gspace2d object
# (gspace.lse / gspace._log_conv) not provided here; only the default 'bce' loss is
# implemented.


if __name__ == "__main__":
    key = jax.random.PRNGKey(0)

    def _ref_bce(lg, tg):
        xf = lg.astype(jnp.float32)
        zf = tg.astype(jnp.float32)
        return jnp.sum(jnp.maximum(xf, 0.0) - xf * zf + jnp.log1p(jnp.exp(-jnp.abs(xf))))

    # Small NCHW shapes consistent with the module's forward.
    k1, k2 = jax.random.split(key)
    logits = jax.random.normal(k1, (2, 4, 16, 16), dtype=jnp.float32)
    target = jax.random.uniform(k2, (2, 4, 16, 16), dtype=jnp.float32)  # soft targets in [0,1]
    loss = jax.block_until_ready(last_layer_forward_bce(logits, target))
    ref = _ref_bce(logits, target)
    assert jnp.allclose(loss, ref, rtol=1e-5, atol=1e-3), (loss, ref)

    # Second check: exercises the multi-step grid, folded accumulator and edge-mask path.
    k3, k4 = jax.random.split(k2)
    logits2 = jax.random.normal(k3, (5, 9, 160, 160), dtype=jnp.float32)
    target2 = jax.random.uniform(k4, (5, 9, 160, 160), dtype=jnp.float32)
    loss2 = jax.block_until_ready(last_layer_forward_bce(logits2, target2))
    ref2 = _ref_bce(logits2, target2)
    assert jnp.allclose(loss2, ref2, rtol=1e-4, atol=1e-1), (loss2, ref2)

    print("KERNEL_OK")
</pallas_src>

<mosaic_0001>
module attributes {stable_mosaic.version = 11 : i64} {
  func.func @_bce_sum_kernel(%arg0: i32, %arg1: i32, %arg2: memref<2x1024xf32, #tpu.memory_space<vmem>>, %arg3: memref<2x1024xf32, #tpu.memory_space<vmem>>, %arg4: memref<1x8x128xf32, #tpu.memory_space<vmem>>, %arg5: memref<2x1024xf32, #tpu.memory_space<vmem>>) attributes {dimension_semantics = [#tpu.dimension_semantics<parallel>, #tpu.dimension_semantics<arbitrary>], iteration_bounds = array<i64: 1, 1>, scalar_prefetch = 0 : i64, scratch_operands = 1 : i64, tpu.core_type = #tpu.core_type<tc>, window_params = [{transform_indices = @transform_0, window_bounds = array<i64: 2, 1024>}, {transform_indices = @transform_1, window_bounds = array<i64: 2, 1024>}, {transform_indices = @transform_2, window_bounds = array<i64: 1, 8, 128>}]} {
    %c0_i32 = arith.constant 0 : i32
    %0 = arith.cmpi eq, %arg1, %c0_i32 : i32
    %1 = arith.extui %0 : i1 to i32
    %c0_i32_0 = arith.constant 0 : i32
    %2 = arith.cmpi ne, %1, %c0_i32_0 : i32
    scf.if %2 {
      %cst_11 = arith.constant 0.000000e+00 : f32
      %21 = vector.broadcast %cst_11 : f32 to vector<2x1024xf32>
      %c0_12 = arith.constant 0 : index
      %c0_13 = arith.constant 0 : index
      %22 = vector.load %arg5[%c0_12, %c0_13] : memref<2x1024xf32, #tpu.memory_space<vmem>>, vector<2x1024xf32>
      tpu.vector_store %arg5[%c0_12, %c0_13], %21 {strides = array<i32>} : memref<2x1024xf32, #tpu.memory_space<vmem>>, vector<2x1024xf32>,
    } else {
    }
    %c0 = arith.constant 0 : index
    %c0_1 = arith.constant 0 : index
    %3 = vector.load %arg2[%c0, %c0_1] : memref<2x1024xf32, #tpu.memory_space<vmem>>, vector<2x1024xf32>
    %c0_2 = arith.constant 0 : index
    %c0_3 = arith.constant 0 : index
    %4 = vector.load %arg3[%c0_2, %c0_3] : memref<2x1024xf32, #tpu.memory_space<vmem>>, vector<2x1024xf32>
    %cst = arith.constant 0.000000e+00 : f32
    %5 = vector.broadcast %cst : f32 to vector<2x1024xf32>
    %6 = arith.maximumf %3, %5 : vector<2x1024xf32>
    %7 = arith.mulf %3, %4 : vector<2x1024xf32>
    %8 = arith.subf %6, %7 : vector<2x1024xf32>
    %9 = math.absf %3 : vector<2x1024xf32>
    %cst_4 = arith.constant 0.000000e+00 : f32
    %10 = vector.broadcast %cst_4 : f32 to vector<2x1024xf32>
    %11 = arith.subf %10, %9 : vector<2x1024xf32>
    %12 = math.exp %11 : vector<2x1024xf32>
    %13 = math.log1p %12 : vector<2x1024xf32>
    %14 = arith.addf %8, %13 : vector<2x1024xf32>
    %c0_5 = arith.constant 0 : index
    %c0_6 = arith.constant 0 : index
    %15 = vector.load %arg5[%c0_5, %c0_6] : memref<2x1024xf32, #tpu.memory_space<vmem>>, vector<2x1024xf32>
    %16 = arith.addf %15, %14 : vector<2x1024xf32>
    %c0_7 = arith.constant 0 : index
    %c0_8 = arith.constant 0 : index
    %17 = vector.load %arg5[%c0_7, %c0_8] : memref<2x1024xf32, #tpu.memory_space<vmem>>, vector<2x1024xf32>
    tpu.vector_store %arg5[%c0_7, %c0_8], %16 {strides = array<i32>} : memref<2x1024xf32, #tpu.memory_space<vmem>>, vector<2x1024xf32>,
    %c0_i32_9 = arith.constant 0 : i32
    %18 = arith.cmpi eq, %arg1, %c0_i32_9 : i32
    %19 = arith.extui %18 : i1 to i32
    %c0_i32_10 = arith.constant 0 : i32
    %20 = arith.cmpi ne, %19, %c0_i32_10 : i32
    scf.if %20 {
      %c0_11 = arith.constant 0 : index
      %c0_12 = arith.constant 0 : index
      %21 = vector.load %arg5[%c0_11, %c0_12] : memref<2x1024xf32, #tpu.memory_space<vmem>>, vector<2x1024xf32>
      %22 = vector.shape_cast %21 : vector<2x1024xf32> to vector<1x2x1024xf32>
      %cst_13 = arith.constant dense<0.000000e+00> : vector<1xf32>
      %23 = vector.multi_reduction <add>, %22, %cst_13 [1, 2] : vector<1x2x1024xf32> to vector<1xf32>
      %24 = vector.shape_cast %23 : vector<1xf32> to vector<1x1x1xf32>
      %25 = vector.extract %24[0, 0, 0] : f32 from vector<1x1x1xf32>
      %26 = vector.broadcast %25 : f32 to vector<1x8x128xf32>
      %c0_14 = arith.constant 0 : index
      %c0_15 = arith.constant 0 : index
      %c0_16 = arith.constant 0 : index
      %27 = vector.load %arg4[%c0_14, %c0_15, %c0_16] : memref<1x8x128xf32, #tpu.memory_space<vmem>>, vector<1x8x128xf32>
      tpu.vector_store %arg4[%c0_14, %c0_15, %c0_16], %26 {strides = array<i32>} : memref<1x8x128xf32, #tpu.memory_space<vmem>>, vector<1x8x128xf32>,
    } else {
    }
    return
  }
  func.func @transform_0(%arg0: i32, %arg1: i32) -> (i32, i32) {
    %c1_i32 = arith.constant 1 : i32
    %0 = arith.muli %arg0, %c1_i32 : i32
    %1 = arith.addi %0, %arg1 : i32
    %c0_i32 = arith.constant 0 : i32
    %2 = arith.minsi %1, %c0_i32 : i32
    %c0_i32_0 = arith.constant 0 : i32
    %c0_i32_1 = arith.constant 0 : i32
    return %2, %c0_i32_0 : i32, i32
  }
  func.func @transform_1(%arg0: i32, %arg1: i32) -> (i32, i32) {
    %c1_i32 = arith.constant 1 : i32
    %0 = arith.muli %arg0, %c1_i32 : i32
    %1 = arith.addi %0, %arg1 : i32
    %c0_i32 = arith.constant 0 : i32
    %2 = arith.minsi %1, %c0_i32 : i32
    %c0_i32_0 = arith.constant 0 : i32
    %c0_i32_1 = arith.constant 0 : i32
    return %2, %c0_i32_0 : i32, i32
  }
  func.func @transform_2(%arg0: i32, %arg1: i32) -> (i32, i32, i32) {
    %c0_i32 = arith.constant 0 : i32
    %c0_i32_0 = arith.constant 0 : i32
    %c0_i32_1 = arith.constant 0 : i32
    return %arg0, %c0_i32, %c0_i32_0 : i32, i32, i32
  }
}

</mosaic_0001>

<bundles_post_ra>
// kernel: tpu_custom_call.1
= control target key start
LH: loop header
LB: loop body
LE: loop exit
PB: predicated region body
PF: predicated region fallthrough
CT: control target
= control target key end

     0   :  { %7 = vsyncpa [#allocation4], 0  ;;  %s349_s0 = inlined_call_operand.hbm [shape: f32[2,1024], index: 0, kind: input, shape index: {}]   ;;  %s350_s1 = inlined_call_operand.hbm [shape: f32[2,1024], index: 1, kind: input, shape index: {}]   ;;  %s351_s2 = inlined_call_operand.hbm [shape: f32[1,8,128], index: 2, kind: output, shape index: {}]  }
   0x1   :  { %8 = vsyncpa [#allocation7], 0 }
   0x2   :  { %9 = vsyncpa [#allocation5], 0  ;;  %s286_s9 = smov [#allocation3]   ;;  %s287_s11 = smov [#allocation6]  }
   0x3   :  { %s22_s10 = sshll.u32 %s286_s9, 4  ;;  %s38_s12 = sshll.u32 %s287_s11, 4  ;;  %s23_s10 = int_to_ptr.vmem [resolvable:$true] %s22_s10  ;;  %s39_s12 = int_to_ptr.vmem [resolvable:$true] %s38_s12 }
   0x4   :  { %s214_s15 = scalar_lea.hbm %s349_s0, 256 }
   0x5   :  { %p215_p0 = scmp.ne.s32.totalorder %s349_s0, %s214_s15  ;;  %p218_p1 = scmp.lt.u32.totalorder %s214_s15, %s349_s0 }
   0x7   :  { %p220_p2 = pnand %p218_p1, %p215_p0 }
   0x9   :  { %223 = shalt.err (!%p220_p2)
}
   0xa   :  { %s224_s20 = scalar_lea.vmem %s23_s10, 256  ;;  %p229_p4 = scmp.lt.s32.totalorder %s23_s10, %s23_s10 }
   0xb   :  { %p225_p3 = scmp.ne.s32.totalorder %s23_s10, %s224_s20  ;;  %p230_p5 = scmp.lt.s32.totalorder %s224_s20, %s224_s20 }
   0xd   :  { %p231_p6 = por %p230_p5, %p229_p4 }
   0xf   :  { %p232_p7 = pnand %p231_p6, %p225_p3 }
  0x11   :  { %235 = shalt.err (!%p232_p7)
}
  0x12   :  { %25 = dma.hbm_to_vmem [thread:$0]  %s349_s0, 256, %s23_s10, [#allocation4]  }
  0x13   :  { %s236_s25 = scalar_lea.hbm %s350_s1, 256 }
  0x14   :  { %p237_p8 = scmp.ne.s32.totalorder %s350_s1, %s236_s25  ;;  %p240_p9 = scmp.lt.u32.totalorder %s236_s25, %s350_s1 }
  0x16   :  { %p242_p10 = pnand %p240_p9, %p237_p8 }
  0x18   :  { %245 = shalt.err (!%p242_p10)
}
  0x19   :  { %s246_s30 = scalar_lea.vmem %s39_s12, 256  ;;  %p251_p12 = scmp.lt.s32.totalorder %s39_s12, %s39_s12 }
  0x1a   :  { %p247_p11 = scmp.ne.s32.totalorder %s39_s12, %s246_s30  ;;  %p252_p13 = scmp.lt.s32.totalorder %s246_s30, %s246_s30 }
  0x1c   :  { %p253_p0 = por %p252_p13, %p251_p12 }
  0x1e   :  { %p254_p1 = pnand %p253_p0, %p247_p11 }
  0x20   :  { %257 = shalt.err (!%p254_p1)
}
  0x21   :  { %41 = dma.hbm_to_vmem [thread:$0]  %s350_s1, 256, %s39_s12, [#allocation7]  }
  0x22   :  { %280 = dma.done.wait [#allocation4], 256  }
  0x23   :  { %281 = vsyncadd [#allocation4], 4294967040 }
  0x24   :  { %282 = dma.done.wait [#allocation7], 256  }
  0x25   :  { %283 = vsyncadd [#allocation7], 4294967040  ;;  %v60_v0 = vld [vmem:[#allocation3] sm:$0xff]  ;;  %v61_v1 = vld [vmem:[#allocation3 + $0x8] sm:$0xff]  ;;  %v288_v16 = vmov 1983009808   ;;  %v115_v18 = vlaneseq }
  0x26   :  { %v70_v2 = vand.u32 2147483647, %v60_v0  ;;  %v71_v3 = vand.u32 2147483647, %v61_v1  ;;  %v62_v14 = vld [vmem:[#allocation6] sm:$0xff]  ;;  %v63_v15 = vld [vmem:[#allocation6 + $0x8] sm:$0xff]  ;;  %v113_v17 = vunpack.c.l.s4 %v288_v16 }
  0x27   :  { %v64_v20 = vmax.f32 %v60_v0, 0.0  ;;  %v66_v21 = vmul.f32 %v62_v14, %v60_v0  ;;  %v65_v24 = vmax.f32 %v61_v1, 0.0  ;;  %v67_v25 = vmul.f32 %v63_v15, %v61_v1  ;;  %s289_s1 = smov [#allocation8]  }
  0x28   :  { %v72_v4 = vsub.f32 0.0, %v70_v2  ;;  %v73_v5 = vsub.f32 0.0, %v71_v3  ;;  %v114_v27 = vunpack.c.0.s8 %v113_v17  ;;  %v116_v28 = vshrl.u32 %v115_v18, 7  ;;  %s186_s4 = sshll.u32 %s289_s1, 4  ;;  %s187_s4 = int_to_ptr.vmem [resolvable:$true] %s186_s4 }
  0x29   :  { %v68_v31 = vsub.f32 %v64_v20, %v66_v21  ;;  %v69_v34 = vsub.f32 %v65_v24, %v67_v25  ;;  %vm153_vm2 = vcmask 1041408   ;;  %s258_s6 = scalar_lea.vmem %s187_s4, 128  ;;  %p263_p3 = scmp.lt.s32.totalorder %s187_s4, %s187_s4 }
  0x2a   :  { %v74_v6 = vmul.f32 1.442695, %v72_v4  ;;  %v76_v7 = vmul.f32 1.442695, %v73_v5  ;;  %v117_v37 = vsub.s32 %v114_v27, %v116_v28  ;;  %p259_p2 = scmp.ne.s32.totalorder %s187_s4, %s258_s6  ;;  %p264_p4 = scmp.lt.s32.totalorder %s258_s6, %s258_s6 }
  0x2c   :  { %206 = vpow2.f32 %v74_v6  ;;  %p265_p5 = por %p264_p4, %p263_p3 }
  0x2d   :  { %208 = vpow2.f32 %v76_v7 }
  0x2e   :  { %p266_p6 = pnand %p265_p5, %p259_p2 }
  0x36   :  { %v207_v8 = vpop.eup %206 }
  0x37   :  { %v209_v9 = vpop.eup %208  ;;  %v78_v10 = vadd.f32 1.0, %v207_v8  ;;  %v81_v12 = vmul.f32 -0.5, %v207_v8  ;;  %v84_v22 = vand.u32 2147483647, %v207_v8 }
  0x38   :  { %v87_v11 = vadd.f32 1.0, %v209_v9  ;;  %v90_v13 = vmul.f32 -0.5, %v209_v9  ;;  %v93_v26 = vand.u32 2147483647, %v209_v9 }
  0x39   :  { %210 = vlog2.f32 %v78_v10  ;;  %v82_v19 = vadd.f32 1.0, %v81_v12  ;;  %vm85_vm0 = vcmp.lt.f32.partialorder %v84_v22, 0.0004427343 }
  0x3a   :  { %212 = vlog2.f32 %v87_v11  ;;  %v91_v23 = vadd.f32 1.0, %v90_v13  ;;  %vm94_vm1 = vcmp.lt.f32.partialorder %v93_v26, 0.0004427343 }
  0x3b   :  { %v83_v29 = vmul.f32 %v207_v8, %v82_v19 }
  0x3c   :  { %v92_v32 = vmul.f32 %v209_v9, %v91_v23 }
  0x43   :  { %v211_v30 = vpop.eup %210 }
  0x44   :  { %v213_v33 = vpop.eup %212  ;;  %v80_v35 = vmul.f32 0.6931472, %v211_v30 }
  0x45   :  { %v89_v36 = vmul.f32 0.6931472, %v213_v33 }
  0x46   :  { %v86_v38 = vsel %vm85_vm0, %v83_v29, %v80_v35 }
  0x47   :  { %v95_v39 = vsel %vm94_vm1, %v92_v32, %v89_v36  ;;  %v96_v40 = vadd.f32 %v86_v38, %v68_v31 }
  0x48   :  { %v97_v41 = vadd.f32 %v95_v39, %v69_v34 }
  0x49   :  { %v111_v42 = vcombine.high %v96_v40, %v96_v40  ;;  %v118_v43 = vrot.slane %v96_v40, %v117_v37 }
  0x4a   :  { %v128_v44 = vcombine.high %v97_v41, %v97_v41  ;;  %v135_v47 = vrot.slane %v97_v41, %v117_v37 }
  0x4b   :  { %v125_v45 = vrot.slane %v111_v42, %v117_v37  ;;  %v126_v46 = vcombine.high %v118_v43, %v118_v43  ;;  %v154_v48 = vsel %vm153_vm2, %v118_v43, 0.0 }
  0x4c   :  { %v142_v53 = vrot.slane %v128_v44, %v117_v37  ;;  %v143_v54 = vcombine.high %v135_v47, %v135_v47  ;;  %v161_v57 = vsel %vm153_vm2, %v135_v47, 0.0 }
  0x4d   :  { %v127_v49 = vcombine.high %v125_v45, %v125_v45  ;;  %v155_v50 = vsel %vm153_vm2, %v126_v46, 0.0  ;;  %v157_v51 = vsel %vm153_vm2, %v125_v45, 0.0 }
  0x4e   :  { %v156_v52 = vadd.f32 %v155_v50, %v154_v48  ;;  %v144_v59 = vcombine.high %v142_v53, %v142_v53  ;;  %v163_v60 = vsel %vm153_vm2, %v143_v54, 0.0  ;;  %v165_v62 = vsel %vm153_vm2, %v142_v53, 0.0 }
  0x4f   :  { %v159_v55 = vsel %vm153_vm2, %v127_v49, 0.0 }
  0x50   :  { %v158_v56 = vadd.f32 %v157_v51, %v156_v52  ;;  %v167_v0 = vsel %vm153_vm2, %v144_v59, 0.0 }
  0x52   :  { %v160_v58 = vadd.f32 %v159_v55, %v158_v56 }
  0x54   :  { %v162_v61 = vadd.f32 %v161_v57, %v160_v58 }
  0x56   :  { %v164_v63 = vadd.f32 %v163_v60, %v162_v61 }
  0x58   :  { %v166_v1 = vadd.f32 %v165_v62, %v164_v63 }
  0x5a   :  { %v168_v2 = vadd.f32 %v167_v0, %v166_v1 }
  0x5c   :  { %169 = vadd.xlane.f32.xlu0 %v168_v2 }
  0xe9   :  { %v170_v3 = vpop.xlane.xlu0 %169 }
  0xea   :  { %v171_v4 = vrot.slane %v170_v3, 4 }
  0xec   :  { %v172_v5 = vadd.f32 %v171_v4, %v170_v3 }
  0xee   :  { %v173_v6 = vrot.slane %v172_v5, 2 }
  0xf0   :  { %v174_v7 = vadd.f32 %v173_v6, %v172_v5 }
  0xf2   :  { %v175_v8 = vrot.slane %v174_v7, 1 }
  0xf4   :  { %v176_v9 = vadd.f32 %v175_v8, %v174_v7 }
  0xf6   :  { %200 = vpush %v176_v9 }
 0x127   :  { %s201_s5 = spop %200 }
 0x128   :  { %v178_v10 = vstv %s201_s5 }
 0x129   :  { %179 = vst [vmem:[#allocation8] sm:$0xff] %v178_v10 }
 0x12a   :  { %269 = shalt.err (!%p266_p6)
}
 0x12b   :  { %s270_s9 = scalar_lea.hbm %s351_s2, 128 }
 0x12c   :  { %p271_p7 = scmp.ne.s32.totalorder %s351_s2, %s270_s9  ;;  %p274_p8 = scmp.lt.u32.totalorder %s270_s9, %s351_s2 }
 0x12e   :  { %p276_p9 = pnand %p274_p8, %p271_p7 }
 0x130   :  { %279 = shalt.err (!%p276_p9)
}
 0x131   :  { %189 = dma.vmem_to_hbm [thread:$0]  %s187_s4, 128, %s351_s2, [#allocation5]  }
 0x132   :  { %284 = dma.done.wait [#allocation5], 128  }
 0x133   :  { %285 = vsyncadd [#allocation5], 4294967168 }
 0x134   :  { %193 = vsyncpa [#allocation4], 1 }
 0x135   :  { %194 = vsyncpa [#allocation7], 1 }
 0x136   :  { %195 = vsyncpa [#allocation5], 1 }

</bundles_post_ra>
